<compile_context>
chip_gen: v7x
topology: tpu7x:2x2x1
jax: 0.10.0
libtpu: 0.0.40
codegen_flags: <defaults>
</compile_context>

<pallas_src>
import functools

import jax
import jax.numpy as jnp
from jax.experimental import pallas as pl
from jax.experimental.pallas import tpu as pltpu


# --------------------------------------------------------------------------------------
# SamePad3d padding computation (matches the PyTorch module exactly)
# --------------------------------------------------------------------------------------
def _triple(v):
    if isinstance(v, int):
        return (v, v, v)
    return tuple(v)


def _compute_pad(kernel, stride, size):
    if size % stride == 0:
        return max(kernel - stride, 0)
    return max(kernel - size % stride, 0)


def same_pad_3d_amounts(shape_thw, kernel_size, stride):
    kernel_size = _triple(kernel_size)
    stride = _triple(stride)
    pads = []
    for d in range(3):
        p = _compute_pad(kernel_size[d], stride[d], shape_thw[d])
        pads.append((p // 2, p - p // 2))
    return pads  # [(t_f, t_b), (h_f, h_b), (w_f, w_b)]


def _largest_divisor_leq(n, cap):
    cap = max(1, min(n, cap))
    for d in range(cap, 0, -1):
        if n % d == 0:
            return d
    return 1


# --------------------------------------------------------------------------------------
# In-kernel helpers
# --------------------------------------------------------------------------------------
def _zero_pad_axis(v, axis, before, after):
    """Build the zero-padded value in VMEM (no double store of the interior)."""
    if before == 0 and after == 0:
        return v
    parts = []
    if before:
        shp = list(v.shape)
        shp[axis] = before
        parts.append(jnp.zeros(shp, v.dtype))
    parts.append(v)
    if after:
        shp = list(v.shape)
        shp[axis] = after
        parts.append(jnp.zeros(shp, v.dtype))
    return jnp.concatenate(parts, axis=axis)


# --------------------------------------------------------------------------------------
# Pallas kernels
# --------------------------------------------------------------------------------------
def _pad_volume_kernel(x_ref, o_ref, *, pad_t, pad_h, pad_w):
    """P1: whole padded (Tp, Hp, Wp) volume for TILE_NC channel-planes per step."""
    v = x_ref[...]                       # (TILE_NC, T, H, W)
    v = _zero_pad_axis(v, 3, *pad_w)     # W (lane dim)
    v = _zero_pad_axis(v, 2, *pad_h)     # H (sublane dim)
    v = _zero_pad_axis(v, 1, *pad_t)     # T
    o_ref[...] = v                       # one full-block (block-origin aligned) store


def _pad_plane_kernel(x_ref, o_ref, *, pt_f, t_in, pad_h, pad_w):
    """P2 fallback: one output-T plane (TILE_NC of them) per grid step."""
    t_out = pl.program_id(1)
    is_data = jnp.logical_and(t_out >= pt_f, t_out < pt_f + t_in)

    @pl.when(is_data)
    def _():
        v = x_ref[...]                   # (TILE_NC, 1, H, W)
        v = _zero_pad_axis(v, 3, *pad_w)
        v = _zero_pad_axis(v, 2, *pad_h)
        o_ref[...] = v

    @pl.when(jnp.logical_not(is_data))
    def _():
        o_ref[...] = jnp.zeros_like(o_ref)


# --------------------------------------------------------------------------------------
# Wrapper
# --------------------------------------------------------------------------------------
def same_pad_3d(x, kernel_size=(1, 1, 1), stride=(1, 1, 1), *,
                target_block_bytes=2 * 1024 * 1024,
                vmem_limit_bytes=32 * 1024 * 1024):
    """Pallas implementation of SamePad3d.forward.  x: [N, C, T, H, W]."""
    N, C, T, H, W = x.shape
    (pt_f, pt_b), (ph_f, ph_b), (pw_f, pw_b) = same_pad_3d_amounts(
        (T, H, W), kernel_size, stride)

    if pt_f + pt_b + ph_f + ph_b + pw_f + pw_b == 0:
        # Pure identity: don't run a copy kernel at all.
        return x

    Tp, Hp, Wp = T + pt_f + pt_b, H + ph_f + ph_b, W + pw_f + pw_b
    NC = N * C
    # Free reshape for the standard contiguous [N, C, T, H, W] layout.
    x4 = x.reshape(NC, T, H, W)

    itemsize = x.dtype.itemsize
    out_plane_bytes = Hp * Wp * itemsize
    out_vol_bytes = Tp * out_plane_bytes

    if out_vol_bytes <= target_block_bytes:
        # ---------------- P1: big blocks, full (Tp, Hp, Wp) per NC tile --------------
        max_tiles = max(1, target_block_bytes // out_vol_bytes)
        # Cap at NC//2 so the parallel grid has >= 2 steps (keeps both v7x TCs busy).
        cap = max(1, NC // 2) if NC >= 2 else 1
        tile_nc = _largest_divisor_leq(NC, min(max_tiles, cap))

        kernel = functools.partial(
            _pad_volume_kernel,
            pad_t=(pt_f, pt_b), pad_h=(ph_f, ph_b), pad_w=(pw_f, pw_b))

        out4 = pl.pallas_call(
            kernel,
            out_shape=jax.ShapeDtypeStruct((NC, Tp, Hp, Wp), x.dtype),
            grid=(NC // tile_nc,),
            in_specs=[pl.BlockSpec((tile_nc, T, H, W), lambda i: (i, 0, 0, 0))],
            out_specs=pl.BlockSpec((tile_nc, Tp, Hp, Wp), lambda i: (i, 0, 0, 0)),
            compiler_params=pltpu.CompilerParams(
                dimension_semantics=("parallel",),
                vmem_limit_bytes=vmem_limit_bytes),
        )(x4)
    else:
        # ------------- P2: fallback for huge (Tp, Hp, Wp) volumes --------------------
        max_tiles = max(1, target_block_bytes // out_plane_bytes)
        tile_nc = _largest_divisor_leq(NC, max_tiles)

        kernel = functools.partial(
            _pad_plane_kernel,
            pt_f=pt_f, t_in=T, pad_h=(ph_f, ph_b), pad_w=(pw_f, pw_b))

        def x_index_map(i, t):
            # Clamp so every pure T-pad plane maps to the SAME input block index as
            # its neighbouring grid step -> the Pallas pipeline skips the redundant
            # input DMA (their contents are never read anyway).
            return (i, jnp.clip(t - pt_f, 0, T - 1), 0, 0)

        out4 = pl.pallas_call(
            kernel,
            out_shape=jax.ShapeDtypeStruct((NC, Tp, Hp, Wp), x.dtype),
            grid=(NC // tile_nc, Tp),
            in_specs=[pl.BlockSpec((tile_nc, 1, H, W), x_index_map)],
            out_specs=pl.BlockSpec((tile_nc, 1, Hp, Wp), lambda i, t: (i, t, 0, 0)),
            compiler_params=pltpu.CompilerParams(
                dimension_semantics=("parallel", "parallel"),
                vmem_limit_bytes=vmem_limit_bytes),
        )(x4)

    return out4.reshape(N, C, Tp, Hp, Wp)


# --------------------------------------------------------------------------------------
# Pure-JAX reference for correctness checking
# --------------------------------------------------------------------------------------
def same_pad_3d_reference(x, kernel_size, stride):
    N, C, T, H, W = x.shape
    (pt_f, pt_b), (ph_f, ph_b), (pw_f, pw_b) = same_pad_3d_amounts(
        (T, H, W), kernel_size, stride)
    return jnp.pad(
        x, ((0, 0), (0, 0), (pt_f, pt_b), (ph_f, ph_b), (pw_f, pw_b)))


# --------------------------------------------------------------------------------------
if __name__ == "__main__":
    key = jax.random.PRNGKey(0)

    # Small shapes consistent with the module: [N, C, T, H, W]
    N, C, T, H, W = 2, 4, 8, 16, 16
    x = jax.random.normal(key, (N, C, T, H, W), dtype=jnp.float32)

    # (kernel_size, stride, target_block_bytes) — the last config deliberately
    # shrinks the block budget to exercise the P2 per-plane fallback path.
    configs = [
        ((3, 3, 3), (1, 1, 1), 2 * 1024 * 1024),  # symmetric pad, P1 path
        ((3, 3, 3), (1, 2, 2), 2 * 1024 * 1024),  # asymmetric H/W pad, P1 path
        ((5, 3, 3), (2, 2, 2), 2 * 1024 * 1024),  # (1,2) T pad, P1 path
        ((1, 1, 1), (1, 1, 1), 2 * 1024 * 1024),  # zero pad (identity fast path)
        ((3, 3, 3), (1, 1, 1), 4096),             # forced P2 fallback path
    ]

    for ks, st, tb in configs:
        fwd = jax.jit(functools.partial(
            same_pad_3d, kernel_size=ks, stride=st, target_block_bytes=tb))
        out = jax.block_until_ready(fwd(x))
        ref = same_pad_3d_reference(x, ks, st)
        assert out.shape == ref.shape, (ks, st, out.shape, ref.shape)
        assert bool(jnp.array_equal(out, ref)), (
            ks, st, float(jnp.max(jnp.abs(out - ref))))

    print("KERNEL_OK")
</pallas_src>

<mosaic_0001>
module attributes {stable_mosaic.version = 11 : i64} {
  func.func @_pad_volume_kernel(%arg0: i32, %arg1: memref<4x8x16x16xf32, #tpu.memory_space<vmem>>, %arg2: memref<4x10x18x18xf32, #tpu.memory_space<vmem>>) attributes {dimension_semantics = [#tpu.dimension_semantics<parallel>], iteration_bounds = array<i64: 2>, scalar_prefetch = 0 : i64, scratch_operands = 0 : i64, tpu.core_type = #tpu.core_type<tc>, window_params = [{transform_indices = @transform_0, window_bounds = array<i64: 4, 8, 16, 16>}, {transform_indices = @transform_1, window_bounds = array<i64: 4, 10, 18, 18>}]} {
    %c0 = arith.constant 0 : index
    %c0_0 = arith.constant 0 : index
    %c0_1 = arith.constant 0 : index
    %c0_2 = arith.constant 0 : index
    %0 = vector.load %arg1[%c0, %c0_0, %c0_1, %c0_2] : memref<4x8x16x16xf32, #tpu.memory_space<vmem>>, vector<4x8x16x16xf32>
    %cst = arith.constant 0.000000e+00 : f32
    %1 = vector.broadcast %cst : f32 to vector<4x8x16x1xf32>
    %cst_3 = arith.constant 0.000000e+00 : f32
    %2 = vector.broadcast %cst_3 : f32 to vector<4x8x16x1xf32>
    %3 = tpu.concatenate %1, %0, %2 in 3 : vector<4x8x16x1xf32>, vector<4x8x16x16xf32>, vector<4x8x16x1xf32> -> vector<4x8x16x18xf32>
    %cst_4 = arith.constant 0.000000e+00 : f32
    %4 = vector.broadcast %cst_4 : f32 to vector<4x8x1x18xf32>
    %cst_5 = arith.constant 0.000000e+00 : f32
    %5 = vector.broadcast %cst_5 : f32 to vector<4x8x1x18xf32>
    %6 = tpu.concatenate %4, %3, %5 in 2 : vector<4x8x1x18xf32>, vector<4x8x16x18xf32>, vector<4x8x1x18xf32> -> vector<4x8x18x18xf32>
    %cst_6 = arith.constant 0.000000e+00 : f32
    %7 = vector.broadcast %cst_6 : f32 to vector<4x1x18x18xf32>
    %cst_7 = arith.constant 0.000000e+00 : f32
    %8 = vector.broadcast %cst_7 : f32 to vector<4x1x18x18xf32>
    %9 = tpu.concatenate %7, %6, %8 in 1 : vector<4x1x18x18xf32>, vector<4x8x18x18xf32>, vector<4x1x18x18xf32> -> vector<4x10x18x18xf32>
    %c0_8 = arith.constant 0 : index
    %c0_9 = arith.constant 0 : index
    %c0_10 = arith.constant 0 : index
    %c0_11 = arith.constant 0 : index
    %10 = vector.load %arg2[%c0_8, %c0_9, %c0_10, %c0_11] : memref<4x10x18x18xf32, #tpu.memory_space<vmem>>, vector<4x10x18x18xf32>
    tpu.vector_store %arg2[%c0_8, %c0_9, %c0_10, %c0_11], %9 {strides = array<i32>} : memref<4x10x18x18xf32, #tpu.memory_space<vmem>>, vector<4x10x18x18xf32>,
    return
  }
  func.func @transform_0(%arg0: i32) -> (i32, i32, i32, i32) {
    %c0_i32 = arith.constant 0 : i32
    %c0_i32_0 = arith.constant 0 : i32
    %c0_i32_1 = arith.constant 0 : i32
    %c0_i32_2 = arith.constant 0 : i32
    return %arg0, %c0_i32, %c0_i32_0, %c0_i32_1 : i32, i32, i32, i32
  }
  func.func @transform_1(%arg0: i32) -> (i32, i32, i32, i32) {
    %c0_i32 = arith.constant 0 : i32
    %c0_i32_0 = arith.constant 0 : i32
    %c0_i32_1 = arith.constant 0 : i32
    %c0_i32_2 = arith.constant 0 : i32
    return %arg0, %c0_i32, %c0_i32_0, %c0_i32_1 : i32, i32, i32, i32
  }
}

</mosaic_0001>

<bundles_post_ra>
// kernel: same_pad_3d.1
= control target key start
LH: loop header
LB: loop body
LE: loop exit
PB: predicated region body
PF: predicated region fallthrough
CT: control target
= control target key end

     0   :  { %6 = vsyncpa [#allocation3], 0  ;;  %s1948_s0 = inlined_call_operand.hbm [shape: f32[8,8,16,16], index: 0, kind: input, shape index: {}]   ;;  %s1949_s1 = inlined_call_operand.vmem [shape: f32[8,10,18,18], index: 1, kind: output, shape index: {}]  }
   0x1   :  { %8 = vsyncpa [#allocation3 + $0x1], 0  ;;  %s1245_s6 = smov 0   ;;  %s1247_s7 = smov 0  }
   0x2   :  { %s1249_s8 = smov 0   ;;  %s1251_s9 = smov 0  }
   0x3 LB: > { %s1104_s10 = sadd.s32 4294967295, %s1228_s9   ;;  %s1265_s11 = sadd.s32 1, %s1228_s9   ;;  %s1228_s9 = sphi %s1251_s9, %s1956_s9   ;;  %s1224_s8 = sphi %s1249_s8, %s1955_s8   ;;  %s1220_s7 = sphi %s1247_s7, %s1954_s7   ;;  %s1216_s6 = sphi %s1245_s6, %s1953_s6  }
   0x4   : > { %s18_s12 = ssub.s32 %s1228_s9, %s1265_s11  ;;  %s21_s13 = sadd.s32 1, %s1224_s8 }
   0x5   : > { %p19_p0 = scmp.eq.s32.totalorder %s18_s12, 0  ;;  %p28_p1 = scmp.ne.s32.totalorder %s1224_s8, %s1220_s7 }
   0x6   : > { %p29_p2 = scmp.eq.s32.totalorder %s1228_s9, 0  ;;  %p34_p3 = scmp.ne.s32.totalorder %s1220_s7, %s1216_s6 }
   0x7   : > { %s1275_s14 = scalar_select %p19_p0, %s1224_s8, %s21_s13  }
   0x8   : > { %p30_p4 = por %p29_p2, %p28_p1  ;;  %p35_p5 = scmp.eq.s32.totalorder %s1104_s10, 0 }
   0x9   : > { %p1127_p6 = scmp.lt.s32.totalorder %s1228_s9, 2  ;;  %s84_s16 = sand.u32 1, %s1224_s8  }
   0xa   : > { %p1280_p7 = por %p35_p5, %p34_p3  ;;  %s1108_s17 = sshll.u32 %s84_s16, 9 }
   0xb   : > { %s1119_s18 = sshll.u32 %s1228_s9, 13  ;;  %s88_s22 = scalar_lea.vmem [#allocation2], %s1108_s17 }
   0xc   : > { %s1289_s21 = scalar_lea.hbm %s1948_s0, %s1119_s18  ;;  %s96_s23 = sshll.u32 %s88_s22, 4  ;;  %s1291_s23 = int_to_ptr.vmem [resolvable:$true] %s96_s23 }
   0xd   : > { %p1293_p8 = pnand %p1127_p6, %p30_p4  ;;  %s1298_s25 = scalar_lea.sflag [#allocation3], %s84_s16 }
   0xe   : > { %s1164_s26 = scalar_lea.hbm %s1289_s21, 8192  ;;  %s1169_s29 = scalar_lea.hbm %s1948_s0, 16384 }
   0xf   : > { %p1165_p10 = scmp.ne.s32.totalorder %s1289_s21, %s1164_s26  ;;  %p1166_p11 = pneg %p1293_p8 }
  0x10   : > { %p1170_p0 = scmp.lt.u32.totalorder %s1289_s21, %s1948_s0  ;;  %p1171_p1 = scmp.lt.u32.totalorder %s1169_s29, %s1164_s26 }
  0x11   : > { %p1167_p12 = pnand %p1166_p11, %p1165_p10  ;;  %p1173_p3 = scmp.lt.u32.totalorder %s1164_s26, %s1289_s21 }
  0x12   : > { %p1172_p2 = por %p1171_p1, %p1170_p0 }
  0x13   : > { %p1168_p13 = pneg %p1167_p12 }
  0x14   : > { %p1174_p4 = por %p1173_p3, %p1172_p2 }
  0x16   : > { %p1175_p5 = pnand %p1174_p4, %p1168_p13 }
  0x18   : > { %1178 = shalt.err (!%p1175_p5)
}
  0x19   : > { %s1179_s3 = scalar_lea.vmem %s1291_s23, 8192  ;;  %s1230_s4 = smov [#allocation2]  }
  0x1a   : > { %p1180_p6 = scmp.ne.s32.totalorder %s1291_s23, %s1179_s3  ;;  %s1184_s5 = sshll.u32 %s1230_s4, 4  ;;  %s1185_s5 = int_to_ptr.vmem [resolvable:$false] %s1184_s5 }
  0x1b   : > { %s1186_s6 = scalar_lea.vmem %s1185_s5, 16384  ;;  %p1187_p9 = scmp.lt.s32.totalorder %s1291_s23, %s1185_s5 }
  0x1c   : > { %p1182_p10 = pnand %p1180_p6, %p1166_p11  ;;  %p1188_p0 = scmp.lt.s32.totalorder %s1186_s6, %s1179_s3 }
  0x1e   : > { %p1183_p12 = pneg %p1182_p10  ;;  %p1189_p1 = por %p1188_p0, %p1187_p9 }
  0x20   : > { %p1190_p2 = pnand %p1189_p1, %p1183_p12 }
  0x22   : > { %1193 = shalt.err (!%p1190_p2)
}
  0x23   : > { %s1231_s12 = smov 128   ;;  %s1232_s13 = smov 8  }
  0x24   : > { %1126 = dma.hbm_to_vmem [thread:$0]  (!%p1293_p8), %s1289_s21, 8192, %s1291_s23, %s1298_s25, %s1231_s12, %s1231_s12, %s1232_s13  }
  0x25   : > { %p104_p11 = scmp.lt.s32.totalorder %s1228_s9, 3  ;;  %p1952_p13 = scmp.ge.s32.totalorder %s1228_s9, 1 }
  0x27   : > { %p105_p3 = pnand %p1952_p13, %p104_p11 }
  0x28   : > { %s110_s16 = sand.u32 (!%p105_p3), 1, %s1220_s7  }
  0x29   : > { %108 = sbr.rel (%p105_p3) target bundleno = 297 (0x129), region = 24  ;;  %s1113_s17 = sshll.u32 (!%p105_p3), %s110_s16, 9 }
  0x2a   : > { %s111_s18 = scalar_lea.sflag (!%p105_p3), [#allocation3], %s110_s16  ;;  %s1330_s19 = scalar_lea.vmem (!%p105_p3), [#allocation2], %s1113_s17 }
  0x30   : > { %1211 = dma.done.wait (%p1280_p7), %s111_s18, 8192  }
  0x31   : > { %1213 = vsyncadd (%p1280_p7), %s111_s18, 4294959104  ;;  %s1114_s20 = sshll.u32 %s1104_s10, 2  ;;  %vm913_vm0 = vcmask 146432   ;;  %vm916_vm1 = vcmask 140288   ;;  %v144_v0 = vld [vmem:[%s1330_s19 + $0x10] sm:$0xff]  ;;  %v142_v1 = vld [vmem:[%s1330_s19] sm:$0xff] }
  0x32   : > { %p136_p8 = scmp.lt.s32.totalorder %s1114_s20, 7  ;;  %v1233_v2 = vmov 0.0   ;;  %s1234_s9 = smov 1   ;;  %v145_v3 = vld [vmem:[%s1330_s19 + $0x18] sm:$0xff]  ;;  %v143_v4 = vld [vmem:[%s1330_s19 + $0x8] sm:$0xff]  ;;  %v146_v6 = vld [vmem:[%s1330_s19 + $0x20] sm:$0xff] }
  0x33   : > { %274 = vrot.lane.b32.xlu1 %v144_v0, %s1234_s9  ;;  %270 = vrot.lane.b32.xlu0 %v142_v1, %s1234_s9  ;;  %v147_v5 = vld [vmem:[%s1330_s19 + $0x28] sm:$0xff]  ;;  %v149_v7 = vld [vmem:[%s1330_s19 + $0x38] sm:$0xff]  ;;  %vm462_vm2 = vcmask 7168   ;;  %vm527_vm3 = vcmask 138240   ;;  %vm656_vm4 = vcmask 1040384  }
  0x34   : > { %s1958_s20 = smov (!%p136_p8, %s1114_s20), 7  ;;  %v148_v8 = vld [vmem:[%s1330_s19 + $0x30] sm:$0xff]  ;;  %v151_v9 = vld [vmem:[%s1330_s19 + $0x48] sm:$0xff]  ;;  %v150_v10 = vld [vmem:[%s1330_s19 + $0x40] sm:$0xff] }
  0x35   : > { %s1120_s21 = smul.u32 240, %s1958_s20  ;;  %v153_v11 = vld [vmem:[%s1330_s19 + $0x58] sm:$0xff]  ;;  %v152_v12 = vld [vmem:[%s1330_s19 + $0x50] sm:$0xff]  ;;  %v155_v13 = vld [vmem:[%s1330_s19 + $0x68] sm:$0xff] }
  0x36   : > { %v154_v14 = vld [vmem:[%s1330_s19 + $0x60] sm:$0xff]  ;;  %v157_v15 = vld [vmem:[%s1330_s19 + $0x78] sm:$0xff]  ;;  %v156_v16 = vld [vmem:[%s1330_s19 + $0x70] sm:$0xff] }
  0x37   : > { %s1341_s24 = scalar_lea.vmem %s1949_s1, %s1120_s21  ;;  %276 = vrot.lane.b32.xlu1 %v145_v3, %s1234_s9  ;;  %272 = vrot.lane.b32.xlu0 %v143_v4, %s1234_s9  ;;  %v159_v17 = vld [vmem:[%s1330_s19 + $0x88] sm:$0xff]  ;;  %v158_v18 = vld [vmem:[%s1330_s19 + $0x80] sm:$0xff] }
  0x38   : > { %914 = vst.msk [vmem:[%s1341_s24] sm:$0xff] %vm913_vm0, %v1233_v2  ;;  %915 = vst.msk [vmem:[%s1341_s24 + $0x8] sm:$0xff] %vm913_vm0, %v1233_v2  ;;  %v161_v19 = vld [vmem:[%s1330_s19 + $0x98] sm:$0xff]  ;;  %v160_v20 = vld [vmem:[%s1330_s19 + $0x90] sm:$0xff] }
  0x39   : > { %917 = vst.msk [vmem:[%s1341_s24 + $0x10] sm:$0x3] %vm916_vm1, %v1233_v2  ;;  %944 = vst.msk [vmem:[%s1341_s24 + $0xe8] sm:$0x3] %vm916_vm1, %v1233_v2  ;;  %v163_v21 = vld [vmem:[%s1330_s19 + $0xa8] sm:$0xff]  ;;  %v162_v22 = vld [vmem:[%s1330_s19 + $0xa0] sm:$0xff] }
  0x3a   : > { %942 = vst.msk [vmem:[%s1341_s24 + $0xd8] sm:$0xff] %vm913_vm0, %v1233_v2  ;;  %943 = vst.msk [vmem:[%s1341_s24 + $0xe0] sm:$0xff] %vm913_vm0, %v1233_v2  ;;  %v165_v23 = vld [vmem:[%s1330_s19 + $0xb8] sm:$0xff]  ;;  %v164_v24 = vld [vmem:[%s1330_s19 + $0xb0] sm:$0xff] }
  0x3b   : > { %945 = vst.msk [vmem:[%s1341_s24 + $0xf0] sm:$0xff] %vm913_vm0, %v1233_v2  ;;  %946 = vst.msk [vmem:[%s1341_s24 + $0xf8] sm:$0xff] %vm913_vm0, %v1233_v2  ;;  %280 = vrot.lane.b32.xlu1 %v147_v5, %s1234_s9  ;;  %278 = vrot.lane.b32.xlu0 %v146_v6, %s1234_s9 }
  0x3c   : > { %947 = vst.msk [vmem:[%s1341_s24 + $0x100] sm:$0x3] %vm916_vm1, %v1233_v2  ;;  %974 = vst.msk [vmem:[%s1341_s24 + $0x1d8] sm:$0x3] %vm916_vm1, %v1233_v2  ;;  %v167_v25 = vld [vmem:[%s1330_s19 + $0xc8] sm:$0xff]  ;;  %v166_v26 = vld [vmem:[%s1330_s19 + $0xc0] sm:$0xff] }
  0x3d   : > { %972 = vst.msk [vmem:[%s1341_s24 + $0x1c8] sm:$0xff] %vm913_vm0, %v1233_v2  ;;  %973 = vst.msk [vmem:[%s1341_s24 + $0x1d0] sm:$0xff] %vm913_vm0, %v1233_v2  ;;  %v169_v27 = vld [vmem:[%s1330_s19 + $0xd8] sm:$0xff]  ;;  %v168_v28 = vld [vmem:[%s1330_s19 + $0xd0] sm:$0xff] }
  0x3e   : > { %975 = vst.msk [vmem:[%s1341_s24 + $0x1e0] sm:$0xff] %vm913_vm0, %v1233_v2  ;;  %976 = vst.msk [vmem:[%s1341_s24 + $0x1e8] sm:$0xff] %vm913_vm0, %v1233_v2  ;;  %v171_v29 = vld [vmem:[%s1330_s19 + $0xe8] sm:$0xff]  ;;  %v170_v30 = vld [vmem:[%s1330_s19 + $0xe0] sm:$0xff] }
  0x3f   : > { %977 = vst.msk [vmem:[%s1341_s24 + $0x1f0] sm:$0x3] %vm916_vm1, %v1233_v2  ;;  %1004 = vst.msk [vmem:[%s1341_s24 + $0x2c8] sm:$0x3] %vm916_vm1, %v1233_v2  ;;  %284 = vrot.lane.b32.xlu1 %v149_v7, %s1234_s9  ;;  %282 = vrot.lane.b32.xlu0 %v148_v8, %s1234_s9 }
  0x40   : > { %1002 = vst.msk [vmem:[%s1341_s24 + $0x2b8] sm:$0xff] %vm913_vm0, %v1233_v2  ;;  %1003 = vst.msk [vmem:[%s1341_s24 + $0x2c0] sm:$0xff] %vm913_vm0, %v1233_v2  ;;  %v173_v31 = vld [vmem:[%s1330_s19 + $0xf8] sm:$0xff]  ;;  %v172_v32 = vld [vmem:[%s1330_s19 + $0xf0] sm:$0xff] }
  0x41   : > { %1005 = vst.msk [vmem:[%s1341_s24 + $0x2d0] sm:$0xff] %vm913_vm0, %v1233_v2  ;;  %1006 = vst.msk [vmem:[%s1341_s24 + $0x2d8] sm:$0xff] %vm913_vm0, %v1233_v2  ;;  %v175_v33 = vld [vmem:[%s1330_s19 + $0x108] sm:$0xff]  ;;  %v174_v34 = vld [vmem:[%s1330_s19 + $0x100] sm:$0xff] }
  0x42   : > { %1007 = vst.msk [vmem:[%s1341_s24 + $0x2e0] sm:$0x3] %vm916_vm1, %v1233_v2  ;;  %1034 = vst.msk [vmem:[%s1341_s24 + $0x3b8] sm:$0x3] %vm916_vm1, %v1233_v2  ;;  %v177_v35 = vld [vmem:[%s1330_s19 + $0x118] sm:$0xff]  ;;  %v176_v36 = vld [vmem:[%s1330_s19 + $0x110] sm:$0xff] }
  0x43   : > { %1032 = vst.msk [vmem:[%s1341_s24 + $0x3a8] sm:$0xff] %vm913_vm0, %v1233_v2  ;;  %1033 = vst.msk [vmem:[%s1341_s24 + $0x3b0] sm:$0xff] %vm913_vm0, %v1233_v2  ;;  %288 = vrot.lane.b32.xlu1 %v151_v9, %s1234_s9  ;;  %286 = vrot.lane.b32.xlu0 %v150_v10, %s1234_s9 }
  0x44   : > { %v179_v37 = vld [vmem:[%s1330_s19 + $0x128] sm:$0xff]  ;;  %v178_v38 = vld [vmem:[%s1330_s19 + $0x120] sm:$0xff]  ;;  %v181_v39 = vld [vmem:[%s1330_s19 + $0x138] sm:$0xff] }
  0x45   : > { %v180_v40 = vld [vmem:[%s1330_s19 + $0x130] sm:$0xff]  ;;  %v183_v41 = vld [vmem:[%s1330_s19 + $0x148] sm:$0xff]  ;;  %v182_v42 = vld [vmem:[%s1330_s19 + $0x140] sm:$0xff] }
  0x46   : > { %v185_v43 = vld [vmem:[%s1330_s19 + $0x158] sm:$0xff]  ;;  %v184_v44 = vld [vmem:[%s1330_s19 + $0x150] sm:$0xff]  ;;  %v187_v45 = vld [vmem:[%s1330_s19 + $0x168] sm:$0xff] }
  0x47   : > { %292 = vrot.lane.b32.xlu1 %v153_v11, %s1234_s9  ;;  %290 = vrot.lane.b32.xlu0 %v152_v12, %s1234_s9  ;;  %v186_v46 = vld [vmem:[%s1330_s19 + $0x160] sm:$0xff]  ;;  %v189_v47 = vld [vmem:[%s1330_s19 + $0x178] sm:$0xff] }
  0x48   : > { %v188_v48 = vld [vmem:[%s1330_s19 + $0x170] sm:$0xff]  ;;  %v191_v49 = vld [vmem:[%s1330_s19 + $0x188] sm:$0xff]  ;;  %v190_v50 = vld [vmem:[%s1330_s19 + $0x180] sm:$0xff] }
  0x49   : > { %v193_v51 = vld [vmem:[%s1330_s19 + $0x198] sm:$0xff]  ;;  %v192_v52 = vld [vmem:[%s1330_s19 + $0x190] sm:$0xff]  ;;  %v195_v53 = vld [vmem:[%s1330_s19 + $0x1a8] sm:$0xff] }
  0x4a   : > { %v194_v54 = vld [vmem:[%s1330_s19 + $0x1a0] sm:$0xff]  ;;  %v197_v55 = vld [vmem:[%s1330_s19 + $0x1b8] sm:$0xff]  ;;  %v196_v56 = vld [vmem:[%s1330_s19 + $0x1b0] sm:$0xff] }
  0x4b   : > { %296 = vrot.lane.b32.xlu1 %v155_v13, %s1234_s9  ;;  %294 = vrot.lane.b32.xlu0 %v154_v14, %s1234_s9  ;;  %v199_v57 = vld [vmem:[%s1330_s19 + $0x1c8] sm:$0xff]  ;;  %v198_v58 = vld [vmem:[%s1330_s19 + $0x1c0] sm:$0xff] }
  0x4c   : > { %v201_v59 = vld [vmem:[%s1330_s19 + $0x1d8] sm:$0xff]  ;;  %v200_v60 = vld [vmem:[%s1330_s19 + $0x1d0] sm:$0xff]  ;;  %v203_v5 = vld [vmem:[%s1330_s19 + $0x1e8] sm:$0xff] }
  0x4d   : > { %v202_v6 = vld [vmem:[%s1330_s19 + $0x1e0] sm:$0xff] }
  0x4f   : > { %300 = vrot.lane.b32.xlu1 %v157_v15, %s1234_s9  ;;  %298 = vrot.lane.b32.xlu0 %v156_v16, %s1234_s9 }
  0x53   : > { %304 = vrot.lane.b32.xlu1 %v159_v17, %s1234_s9  ;;  %302 = vrot.lane.b32.xlu0 %v158_v18, %s1234_s9  ;;  %v205_v17 = vld [vmem:[%s1330_s19 + $0x1f8] sm:$0xff]  ;;  %v204_v18 = vld [vmem:[%s1330_s19 + $0x1f0] sm:$0xff] }
  0x57   : > { %308 = vrot.lane.b32.xlu1 %v161_v19, %s1234_s9  ;;  %306 = vrot.lane.b32.xlu0 %v160_v20, %s1234_s9 }
  0x5b   : > { %312 = vrot.lane.b32.xlu1 %v163_v21, %s1234_s9  ;;  %310 = vrot.lane.b32.xlu0 %v162_v22, %s1234_s9 }
  0x5f   : > { %316 = vrot.lane.b32.xlu1 %v165_v23, %s1234_s9  ;;  %314 = vrot.lane.b32.xlu0 %v164_v24, %s1234_s9 }
  0x63   : > { %320 = vrot.lane.b32.xlu1 %v167_v25, %s1234_s9  ;;  %318 = vrot.lane.b32.xlu0 %v166_v26, %s1234_s9 }
  0x67   : > { %324 = vrot.lane.b32.xlu1 %v169_v27, %s1234_s9  ;;  %322 = vrot.lane.b32.xlu0 %v168_v28, %s1234_s9 }
  0x6b   : > { %328 = vrot.lane.b32.xlu1 %v171_v29, %s1234_s9  ;;  %326 = vrot.lane.b32.xlu0 %v170_v30, %s1234_s9 }
  0x6f   : > { %332 = vrot.lane.b32.xlu1 %v173_v31, %s1234_s9  ;;  %330 = vrot.lane.b32.xlu0 %v172_v32, %s1234_s9 }
  0x73   : > { %336 = vrot.lane.b32.xlu1 %v175_v33, %s1234_s9  ;;  %334 = vrot.lane.b32.xlu0 %v174_v34, %s1234_s9 }
  0x77   : > { %340 = vrot.lane.b32.xlu1 %v177_v35, %s1234_s9  ;;  %338 = vrot.lane.b32.xlu0 %v176_v36, %s1234_s9 }
  0x7b   : > { %344 = vrot.lane.b32.xlu1 %v179_v37, %s1234_s9  ;;  %342 = vrot.lane.b32.xlu0 %v178_v38, %s1234_s9 }
  0x7f   : > { %348 = vrot.lane.b32.xlu1 %v181_v39, %s1234_s9  ;;  %346 = vrot.lane.b32.xlu0 %v180_v40, %s1234_s9 }
  0x83   : > { %352 = vrot.lane.b32.xlu1 %v183_v41, %s1234_s9  ;;  %350 = vrot.lane.b32.xlu0 %v182_v42, %s1234_s9 }
  0x87   : > { %356 = vrot.lane.b32.xlu1 %v185_v43, %s1234_s9  ;;  %354 = vrot.lane.b32.xlu0 %v184_v44, %s1234_s9 }
  0x8b   : > { %360 = vrot.lane.b32.xlu1 %v187_v45, %s1234_s9  ;;  %358 = vrot.lane.b32.xlu0 %v186_v46, %s1234_s9 }
  0x8f   : > { %364 = vrot.lane.b32.xlu1 %v189_v47, %s1234_s9  ;;  %362 = vrot.lane.b32.xlu0 %v188_v48, %s1234_s9 }
  0x93   : > { %368 = vrot.lane.b32.xlu1 %v191_v49, %s1234_s9  ;;  %366 = vrot.lane.b32.xlu0 %v190_v50, %s1234_s9 }
  0x97   : > { %372 = vrot.lane.b32.xlu1 %v193_v51, %s1234_s9  ;;  %370 = vrot.lane.b32.xlu0 %v192_v52, %s1234_s9 }
  0x9b   : > { %376 = vrot.lane.b32.xlu1 %v195_v53, %s1234_s9  ;;  %374 = vrot.lane.b32.xlu0 %v194_v54, %s1234_s9 }
  0x9f   : > { %380 = vrot.lane.b32.xlu1 %v197_v55, %s1234_s9  ;;  %378 = vrot.lane.b32.xlu0 %v196_v56, %s1234_s9 }
  0xa3   : > { %384 = vrot.lane.b32.xlu1 %v199_v57, %s1234_s9  ;;  %382 = vrot.lane.b32.xlu0 %v198_v58, %s1234_s9 }
  0xa5   : > { %v275_v61 = vpop.permute.xlu1 %274  ;;  %v271_v62 = vpop.permute.xlu0 %270 }
  0xa6   : > { %v465_v63 = vsel %vm462_vm2, 0.0, %v275_v61  ;;  %v463_v0 = vsel %vm462_vm2, 0.0, %v271_v62 }
  0xa7   : > { %v530_v1 = vsel %vm527_vm3, %v465_v63, 0.0  ;;  %v528_v2 = vsel %vm527_vm3, %v463_v0, 0.0  ;;  %388 = vrot.lane.b32.xlu1 %v201_v59, %s1234_s9  ;;  %386 = vrot.lane.b32.xlu0 %v200_v60, %s1234_s9 }
  0xa8   : > { %v660_v3 = vrot.slane %v530_v1, 7  ;;  %v657_v4 = vrot.slane %v528_v2, 7 }
  0xa9   : > { %v277_v7 = vpop.permute.xlu1 %276  ;;  %v273_v8 = vpop.permute.xlu0 %272 }
  0xaa   : > { %v850_v9 = vsel %vm656_vm4, 0.0, %v660_v3  ;;  %v849_v10 = vsel %vm656_vm4, 0.0, %v657_v4  ;;  %v466_v11 = vsel %vm462_vm2, 0.0, %v277_v7  ;;  %v464_v12 = vsel %vm462_vm2, 0.0, %v273_v8 }
  0xab   : > { %921 = vst.msk [vmem:[%s1341_s24 + $0x30] sm:$0xff] %vm913_vm0, %v850_v9  ;;  %918 = vst.msk [vmem:[%s1341_s24 + $0x18] sm:$0xff] %vm913_vm0, %v849_v10  ;;  %v531_v13 = vsel %vm527_vm3, %v466_v11, 0.0  ;;  %v529_v14 = vsel %vm527_vm3, %v464_v12, 0.0  ;;  %392 = vrot.lane.b32.xlu1 %v203_v5, %s1234_s9  ;;  %390 = vrot.lane.b32.xlu0 %v202_v6, %s1234_s9 }
  0xac   : > { %v661_v15 = vrot.slane %v531_v13, 7  ;;  %v658_v16 = vrot.slane %v529_v14, 7 }
  0xad   : > { %v281_v19 = vpop.permute.xlu1 %280  ;;  %v279_v20 = vpop.permute.xlu0 %278 }
  0xae   : > { %v662_v21 = vsel %vm656_vm4, %v660_v3, %v661_v15  ;;  %v882_v22 = vsel %vm656_vm4, %v661_v15, 0.0  ;;  %v659_v23 = vsel %vm656_vm4, %v657_v4, %v658_v16  ;;  %v881_v24 = vsel %vm656_vm4, %v658_v16, 0.0 }
  0xaf   : > { %922 = vst.msk [vmem:[%s1341_s24 + $0x38] sm:$0xff] %vm913_vm0, %v662_v21  ;;  %919 = vst.msk [vmem:[%s1341_s24 + $0x20] sm:$0xff] %vm913_vm0, %v659_v23  ;;  %v468_v25 = vsel %vm462_vm2, 0.0, %v281_v19  ;;  %v467_v26 = vsel %vm462_vm2, 0.0, %v279_v20  ;;  %396 = vrot.lane.b32.xlu1 %v205_v17, %s1234_s9  ;;  %394 = vrot.lane.b32.xlu0 %v204_v18, %s1234_s9 }
  0xb0   : > { %923 = vst.msk [vmem:[%s1341_s24 + $0x40] sm:$0x3] %vm916_vm1, %v882_v22  ;;  %920 = vst.msk [vmem:[%s1341_s24 + $0x28] sm:$0x3] %vm916_vm1, %v881_v24  ;;  %v533_v27 = vsel %vm527_vm3, %v468_v25, 0.0  ;;  %v532_v28 = vsel %vm527_vm3, %v467_v26, 0.0 }
  0xb1   : > { %v664_v29 = vrot.slane %v533_v27, 7  ;;  %v663_v30 = vrot.slane %v532_v28, 7  ;;  %v285_v31 = vpop.permute.xlu1 %284  ;;  %v283_v32 = vpop.permute.xlu0 %282 }
  0xb2   : > { %v470_v33 = vsel %vm462_vm2, 0.0, %v285_v31  ;;  %v469_v34 = vsel %vm462_vm2, 0.0, %v283_v32 }
  0xb3   : > { %v883_v35 = vsel %vm656_vm4, %v664_v29, 0.0  ;;  %v665_v36 = vsel %vm656_vm4, %v663_v30, %v664_v29  ;;  %v851_v37 = vsel %vm656_vm4, 0.0, %v663_v30  ;;  %v535_v38 = vsel %vm527_vm3, %v470_v33, 0.0 }
  0xb4   : > { %926 = vst.msk [vmem:[%s1341_s24 + $0x58] sm:$0x3] %vm916_vm1, %v883_v35  ;;  %v667_v39 = vrot.slane %v535_v38, 7  ;;  %v534_v40 = vsel %vm527_vm3, %v469_v34, 0.0 }
  0xb5   : > { %924 = vst.msk [vmem:[%s1341_s24 + $0x48] sm:$0xff] %vm913_vm0, %v851_v37  ;;  %925 = vst.msk [vmem:[%s1341_s24 + $0x50] sm:$0xff] %vm913_vm0, %v665_v36  ;;  %v666_v41 = vrot.slane %v534_v40, 7  ;;  %v289_v42 = vpop.permute.xlu1 %288  ;;  %v287_v43 = vpop.permute.xlu0 %286 }
  0xb6   : > { %v884_v44 = vsel %vm656_vm4, %v667_v39, 0.0  ;;  %v472_v45 = vsel %vm462_vm2, 0.0, %v289_v42  ;;  %v471_v46 = vsel %vm462_vm2, 0.0, %v287_v43 }
  0xb7   : > { %929 = vst.msk [vmem:[%s1341_s24 + $0x70] sm:$0x3] %vm916_vm1, %v884_v44  ;;  %v668_v47 = vsel %vm656_vm4, %v666_v41, %v667_v39  ;;  %v852_v48 = vsel %vm656_vm4, 0.0, %v666_v41  ;;  %v537_v49 = vsel %vm527_vm3, %v472_v45, 0.0  ;;  %v536_v50 = vsel %vm527_vm3, %v471_v46, 0.0 }
  0xb8   : > { %927 = vst.msk [vmem:[%s1341_s24 + $0x60] sm:$0xff] %vm913_vm0, %v852_v48  ;;  %928 = vst.msk [vmem:[%s1341_s24 + $0x68] sm:$0xff] %vm913_vm0, %v668_v47  ;;  %v670_v51 = vrot.slane %v537_v49, 7  ;;  %v669_v52 = vrot.slane %v536_v50, 7 }
  0xb9   : > { %v293_v53 = vpop.permute.xlu1 %292  ;;  %v291_v54 = vpop.permute.xlu0 %290 }
  0xba   : > { %v885_v55 = vsel %vm656_vm4, %v670_v51, 0.0  ;;  %v671_v56 = vsel %vm656_vm4, %v669_v52, %v670_v51  ;;  %v853_v57 = vsel %vm656_vm4, 0.0, %v669_v52  ;;  %v474_v58 = vsel %vm462_vm2, 0.0, %v293_v53 }
  0xbb   : > { %932 = vst.msk [vmem:[%s1341_s24 + $0x88] sm:$0x3] %vm916_vm1, %v885_v55  ;;  %v539_v59 = vsel %vm527_vm3, %v474_v58, 0.0  ;;  %v473_v60 = vsel %vm462_vm2, 0.0, %v291_v54 }
  0xbc   : > { %930 = vst.msk [vmem:[%s1341_s24 + $0x78] sm:$0xff] %vm913_vm0, %v853_v57  ;;  %931 = vst.msk [vmem:[%s1341_s24 + $0x80] sm:$0xff] %vm913_vm0, %v671_v56  ;;  %v673_v61 = vrot.slane %v539_v59, 7  ;;  %v538_v62 = vsel %vm527_vm3, %v473_v60, 0.0 }
  0xbd   : > { %v672_v63 = vrot.slane %v538_v62, 7  ;;  %v297_v0 = vpop.permute.xlu1 %296  ;;  %v295_v1 = vpop.permute.xlu0 %294 }
  0xbe   : > { %v886_v2 = vsel %vm656_vm4, %v673_v61, 0.0  ;;  %v476_v3 = vsel %vm462_vm2, 0.0, %v297_v0  ;;  %v475_v4 = vsel %vm462_vm2, 0.0, %v295_v1 }
  0xbf   : > { %935 = vst.msk [vmem:[%s1341_s24 + $0xa0] sm:$0x3] %vm916_vm1, %v886_v2  ;;  %v674_v5 = vsel %vm656_vm4, %v672_v63, %v673_v61  ;;  %v854_v6 = vsel %vm656_vm4, 0.0, %v672_v63  ;;  %v541_v7 = vsel %vm527_vm3, %v476_v3, 0.0  ;;  %v540_v8 = vsel %vm527_vm3, %v475_v4, 0.0 }
  0xc0   : > { %933 = vst.msk [vmem:[%s1341_s24 + $0x90] sm:$0xff] %vm913_vm0, %v854_v6  ;;  %934 = vst.msk [vmem:[%s1341_s24 + $0x98] sm:$0xff] %vm913_vm0, %v674_v5  ;;  %v676_v9 = vrot.slane %v541_v7, 7  ;;  %v675_v10 = vrot.slane %v540_v8, 7 }
  0xc1   : > { %v301_v11 = vpop.permute.xlu1 %300  ;;  %v299_v12 = vpop.permute.xlu0 %298 }
  0xc2   : > { %v887_v13 = vsel %vm656_vm4, %v676_v9, 0.0  ;;  %v677_v14 = vsel %vm656_vm4, %v675_v10, %v676_v9  ;;  %v855_v15 = vsel %vm656_vm4, 0.0, %v675_v10  ;;  %v478_v16 = vsel %vm462_vm2, 0.0, %v301_v11 }
  0xc3   : > { %938 = vst.msk [vmem:[%s1341_s24 + $0xb8] sm:$0x3] %vm916_vm1, %v887_v13  ;;  %v543_v17 = vsel %vm527_vm3, %v478_v16, 0.0  ;;  %v477_v18 = vsel %vm462_vm2, 0.0, %v299_v12 }
  0xc4   : > { %936 = vst.msk [vmem:[%s1341_s24 + $0xa8] sm:$0xff] %vm913_vm0, %v855_v15  ;;  %937 = vst.msk [vmem:[%s1341_s24 + $0xb0] sm:$0xff] %vm913_vm0, %v677_v14  ;;  %v679_v19 = vrot.slane %v543_v17, 7  ;;  %v542_v20 = vsel %vm527_vm3, %v477_v18, 0.0 }
  0xc5   : > { %v678_v21 = vrot.slane %v542_v20, 7  ;;  %v305_v22 = vpop.permute.xlu1 %304  ;;  %v303_v23 = vpop.permute.xlu0 %302 }
  0xc6   : > { %v888_v24 = vsel %vm656_vm4, %v679_v19, 0.0  ;;  %v480_v25 = vsel %vm462_vm2, 0.0, %v305_v22  ;;  %v479_v26 = vsel %vm462_vm2, 0.0, %v303_v23 }
  0xc7   : > { %941 = vst.msk [vmem:[%s1341_s24 + $0xd0] sm:$0x3] %vm916_vm1, %v888_v24  ;;  %v680_v27 = vsel %vm656_vm4, %v678_v21, %v679_v19  ;;  %v856_v28 = vsel %vm656_vm4, 0.0, %v678_v21  ;;  %v545_v29 = vsel %vm527_vm3, %v480_v25, 0.0  ;;  %v544_v30 = vsel %vm527_vm3, %v479_v26, 0.0 }
  0xc8   : > { %939 = vst.msk [vmem:[%s1341_s24 + $0xc0] sm:$0xff] %vm913_vm0, %v856_v28  ;;  %940 = vst.msk [vmem:[%s1341_s24 + $0xc8] sm:$0xff] %vm913_vm0, %v680_v27  ;;  %v682_v31 = vrot.slane %v545_v29, 7  ;;  %v681_v32 = vrot.slane %v544_v30, 7 }
  0xc9   : > { %v309_v33 = vpop.permute.xlu1 %308  ;;  %v307_v34 = vpop.permute.xlu0 %306 }
  0xca   : > { %v889_v35 = vsel %vm656_vm4, %v682_v31, 0.0  ;;  %v683_v36 = vsel %vm656_vm4, %v681_v32, %v682_v31  ;;  %v857_v37 = vsel %vm656_vm4, 0.0, %v681_v32  ;;  %v482_v38 = vsel %vm462_vm2, 0.0, %v309_v33 }
  0xcb   : > { %950 = vst.msk [vmem:[%s1341_s24 + $0x118] sm:$0x3] %vm916_vm1, %v889_v35  ;;  %v547_v39 = vsel %vm527_vm3, %v482_v38, 0.0  ;;  %v481_v40 = vsel %vm462_vm2, 0.0, %v307_v34 }
  0xcc   : > { %948 = vst.msk [vmem:[%s1341_s24 + $0x108] sm:$0xff] %vm913_vm0, %v857_v37  ;;  %949 = vst.msk [vmem:[%s1341_s24 + $0x110] sm:$0xff] %vm913_vm0, %v683_v36  ;;  %v685_v41 = vrot.slane %v547_v39, 7  ;;  %v546_v42 = vsel %vm527_vm3, %v481_v40, 0.0 }
  0xcd   : > { %v684_v43 = vrot.slane %v546_v42, 7  ;;  %v313_v44 = vpop.permute.xlu1 %312  ;;  %v311_v45 = vpop.permute.xlu0 %310 }
  0xce   : > { %v890_v46 = vsel %vm656_vm4, %v685_v41, 0.0  ;;  %v484_v47 = vsel %vm462_vm2, 0.0, %v313_v44  ;;  %v483_v48 = vsel %vm462_vm2, 0.0, %v311_v45 }
  0xcf   : > { %953 = vst.msk [vmem:[%s1341_s24 + $0x130] sm:$0x3] %vm916_vm1, %v890_v46  ;;  %v686_v49 = vsel %vm656_vm4, %v684_v43, %v685_v41  ;;  %v858_v50 = vsel %vm656_vm4, 0.0, %v684_v43  ;;  %v549_v51 = vsel %vm527_vm3, %v484_v47, 0.0  ;;  %v548_v52 = vsel %vm527_vm3, %v483_v48, 0.0 }
  0xd0   : > { %951 = vst.msk [vmem:[%s1341_s24 + $0x120] sm:$0xff] %vm913_vm0, %v858_v50  ;;  %952 = vst.msk [vmem:[%s1341_s24 + $0x128] sm:$0xff] %vm913_vm0, %v686_v49  ;;  %v688_v53 = vrot.slane %v549_v51, 7  ;;  %v687_v54 = vrot.slane %v548_v52, 7 }
  0xd1   : > { %v317_v55 = vpop.permute.xlu1 %316  ;;  %v315_v56 = vpop.permute.xlu0 %314 }
  0xd2   : > { %v891_v57 = vsel %vm656_vm4, %v688_v53, 0.0  ;;  %v689_v58 = vsel %vm656_vm4, %v687_v54, %v688_v53  ;;  %v859_v59 = vsel %vm656_vm4, 0.0, %v687_v54  ;;  %v486_v60 = vsel %vm462_vm2, 0.0, %v317_v55 }
  0xd3   : > { %956 = vst.msk [vmem:[%s1341_s24 + $0x148] sm:$0x3] %vm916_vm1, %v891_v57  ;;  %v551_v61 = vsel %vm527_vm3, %v486_v60, 0.0  ;;  %v485_v62 = vsel %vm462_vm2, 0.0, %v315_v56 }
  0xd4   : > { %954 = vst.msk [vmem:[%s1341_s24 + $0x138] sm:$0xff] %vm913_vm0, %v859_v59  ;;  %955 = vst.msk [vmem:[%s1341_s24 + $0x140] sm:$0xff] %vm913_vm0, %v689_v58  ;;  %v691_v63 = vrot.slane %v551_v61, 7  ;;  %v550_v0 = vsel %vm527_vm3, %v485_v62, 0.0 }
  0xd5   : > { %v690_v1 = vrot.slane %v550_v0, 7  ;;  %v321_v2 = vpop.permute.xlu1 %320  ;;  %v319_v3 = vpop.permute.xlu0 %318 }
  0xd6   : > { %v892_v4 = vsel %vm656_vm4, %v691_v63, 0.0  ;;  %v488_v5 = vsel %vm462_vm2, 0.0, %v321_v2  ;;  %v487_v6 = vsel %vm462_vm2, 0.0, %v319_v3 }
  0xd7   : > { %959 = vst.msk [vmem:[%s1341_s24 + $0x160] sm:$0x3] %vm916_vm1, %v892_v4  ;;  %v692_v7 = vsel %vm656_vm4, %v690_v1, %v691_v63  ;;  %v860_v8 = vsel %vm656_vm4, 0.0, %v690_v1  ;;  %v553_v9 = vsel %vm527_vm3, %v488_v5, 0.0  ;;  %v552_v10 = vsel %vm527_vm3, %v487_v6, 0.0 }
  0xd8   : > { %957 = vst.msk [vmem:[%s1341_s24 + $0x150] sm:$0xff] %vm913_vm0, %v860_v8  ;;  %958 = vst.msk [vmem:[%s1341_s24 + $0x158] sm:$0xff] %vm913_vm0, %v692_v7  ;;  %v694_v11 = vrot.slane %v553_v9, 7  ;;  %v693_v12 = vrot.slane %v552_v10, 7 }
  0xd9   : > { %v325_v13 = vpop.permute.xlu1 %324  ;;  %v323_v14 = vpop.permute.xlu0 %322 }
  0xda   : > { %v893_v15 = vsel %vm656_vm4, %v694_v11, 0.0  ;;  %v695_v16 = vsel %vm656_vm4, %v693_v12, %v694_v11  ;;  %v861_v17 = vsel %vm656_vm4, 0.0, %v693_v12  ;;  %v490_v18 = vsel %vm462_vm2, 0.0, %v325_v13 }
  0xdb   : > { %962 = vst.msk [vmem:[%s1341_s24 + $0x178] sm:$0x3] %vm916_vm1, %v893_v15  ;;  %v555_v19 = vsel %vm527_vm3, %v490_v18, 0.0  ;;  %v489_v20 = vsel %vm462_vm2, 0.0, %v323_v14 }
  0xdc   : > { %960 = vst.msk [vmem:[%s1341_s24 + $0x168] sm:$0xff] %vm913_vm0, %v861_v17  ;;  %961 = vst.msk [vmem:[%s1341_s24 + $0x170] sm:$0xff] %vm913_vm0, %v695_v16  ;;  %v697_v21 = vrot.slane %v555_v19, 7  ;;  %v554_v22 = vsel %vm527_vm3, %v489_v20, 0.0 }
  0xdd   : > { %v696_v23 = vrot.slane %v554_v22, 7  ;;  %v329_v24 = vpop.permute.xlu1 %328  ;;  %v327_v25 = vpop.permute.xlu0 %326 }
  0xde   : > { %v894_v26 = vsel %vm656_vm4, %v697_v21, 0.0  ;;  %v492_v27 = vsel %vm462_vm2, 0.0, %v329_v24  ;;  %v491_v28 = vsel %vm462_vm2, 0.0, %v327_v25 }
  0xdf   : > { %965 = vst.msk [vmem:[%s1341_s24 + $0x190] sm:$0x3] %vm916_vm1, %v894_v26  ;;  %v698_v29 = vsel %vm656_vm4, %v696_v23, %v697_v21  ;;  %v862_v30 = vsel %vm656_vm4, 0.0, %v696_v23  ;;  %v557_v31 = vsel %vm527_vm3, %v492_v27, 0.0  ;;  %v556_v32 = vsel %vm527_vm3, %v491_v28, 0.0 }
  0xe0   : > { %963 = vst.msk [vmem:[%s1341_s24 + $0x180] sm:$0xff] %vm913_vm0, %v862_v30  ;;  %964 = vst.msk [vmem:[%s1341_s24 + $0x188] sm:$0xff] %vm913_vm0, %v698_v29  ;;  %v700_v33 = vrot.slane %v557_v31, 7  ;;  %v699_v34 = vrot.slane %v556_v32, 7 }
  0xe1   : > { %v333_v35 = vpop.permute.xlu1 %332  ;;  %v331_v36 = vpop.permute.xlu0 %330 }
  0xe2   : > { %v895_v37 = vsel %vm656_vm4, %v700_v33, 0.0  ;;  %v701_v38 = vsel %vm656_vm4, %v699_v34, %v700_v33  ;;  %v863_v39 = vsel %vm656_vm4, 0.0, %v699_v34  ;;  %v494_v40 = vsel %vm462_vm2, 0.0, %v333_v35 }
  0xe3   : > { %968 = vst.msk [vmem:[%s1341_s24 + $0x1a8] sm:$0x3] %vm916_vm1, %v895_v37  ;;  %v559_v41 = vsel %vm527_vm3, %v494_v40, 0.0  ;;  %v493_v42 = vsel %vm462_vm2, 0.0, %v331_v36 }
  0xe4   : > { %966 = vst.msk [vmem:[%s1341_s24 + $0x198] sm:$0xff] %vm913_vm0, %v863_v39  ;;  %967 = vst.msk [vmem:[%s1341_s24 + $0x1a0] sm:$0xff] %vm913_vm0, %v701_v38  ;;  %v703_v43 = vrot.slane %v559_v41, 7  ;;  %v558_v44 = vsel %vm527_vm3, %v493_v42, 0.0 }
  0xe5   : > { %v702_v45 = vrot.slane %v558_v44, 7  ;;  %v337_v46 = vpop.permute.xlu1 %336  ;;  %v335_v47 = vpop.permute.xlu0 %334 }
  0xe6   : > { %v896_v48 = vsel %vm656_vm4, %v703_v43, 0.0  ;;  %v496_v49 = vsel %vm462_vm2, 0.0, %v337_v46  ;;  %v495_v50 = vsel %vm462_vm2, 0.0, %v335_v47 }
  0xe7   : > { %971 = vst.msk [vmem:[%s1341_s24 + $0x1c0] sm:$0x3] %vm916_vm1, %v896_v48  ;;  %v704_v51 = vsel %vm656_vm4, %v702_v45, %v703_v43  ;;  %v864_v52 = vsel %vm656_vm4, 0.0, %v702_v45  ;;  %v561_v53 = vsel %vm527_vm3, %v496_v49, 0.0  ;;  %v560_v54 = vsel %vm527_vm3, %v495_v50, 0.0 }
  0xe8   : > { %969 = vst.msk [vmem:[%s1341_s24 + $0x1b0] sm:$0xff] %vm913_vm0, %v864_v52  ;;  %970 = vst.msk [vmem:[%s1341_s24 + $0x1b8] sm:$0xff] %vm913_vm0, %v704_v51  ;;  %v706_v55 = vrot.slane %v561_v53, 7  ;;  %v705_v56 = vrot.slane %v560_v54, 7 }
  0xe9   : > { %v341_v57 = vpop.permute.xlu1 %340  ;;  %v339_v58 = vpop.permute.xlu0 %338 }
  0xea   : > { %v897_v59 = vsel %vm656_vm4, %v706_v55, 0.0  ;;  %v707_v60 = vsel %vm656_vm4, %v705_v56, %v706_v55  ;;  %v865_v61 = vsel %vm656_vm4, 0.0, %v705_v56  ;;  %v498_v62 = vsel %vm462_vm2, 0.0, %v341_v57 }
  0xeb   : > { %980 = vst.msk [vmem:[%s1341_s24 + $0x208] sm:$0x3] %vm916_vm1, %v897_v59  ;;  %v563_v63 = vsel %vm527_vm3, %v498_v62, 0.0  ;;  %v497_v0 = vsel %vm462_vm2, 0.0, %v339_v58 }
  0xec   : > { %978 = vst.msk [vmem:[%s1341_s24 + $0x1f8] sm:$0xff] %vm913_vm0, %v865_v61  ;;  %979 = vst.msk [vmem:[%s1341_s24 + $0x200] sm:$0xff] %vm913_vm0, %v707_v60  ;;  %v709_v1 = vrot.slane %v563_v63, 7  ;;  %v562_v2 = vsel %vm527_vm3, %v497_v0, 0.0 }
  0xed   : > { %v708_v3 = vrot.slane %v562_v2, 7  ;;  %v345_v4 = vpop.permute.xlu1 %344  ;;  %v343_v5 = vpop.permute.xlu0 %342 }
  0xee   : > { %v898_v6 = vsel %vm656_vm4, %v709_v1, 0.0  ;;  %v500_v7 = vsel %vm462_vm2, 0.0, %v345_v4  ;;  %v499_v8 = vsel %vm462_vm2, 0.0, %v343_v5 }
  0xef   : > { %983 = vst.msk [vmem:[%s1341_s24 + $0x220] sm:$0x3] %vm916_vm1, %v898_v6  ;;  %v710_v9 = vsel %vm656_vm4, %v708_v3, %v709_v1  ;;  %v866_v10 = vsel %vm656_vm4, 0.0, %v708_v3  ;;  %v565_v11 = vsel %vm527_vm3, %v500_v7, 0.0  ;;  %v564_v12 = vsel %vm527_vm3, %v499_v8, 0.0 }
  0xf0   : > { %981 = vst.msk [vmem:[%s1341_s24 + $0x210] sm:$0xff] %vm913_vm0, %v866_v10  ;;  %982 = vst.msk [vmem:[%s1341_s24 + $0x218] sm:$0xff] %vm913_vm0, %v710_v9  ;;  %v712_v13 = vrot.slane %v565_v11, 7  ;;  %v711_v14 = vrot.slane %v564_v12, 7 }
  0xf1   : > { %v349_v15 = vpop.permute.xlu1 %348  ;;  %v347_v16 = vpop.permute.xlu0 %346 }
  0xf2   : > { %v899_v17 = vsel %vm656_vm4, %v712_v13, 0.0  ;;  %v713_v18 = vsel %vm656_vm4, %v711_v14, %v712_v13  ;;  %v867_v19 = vsel %vm656_vm4, 0.0, %v711_v14  ;;  %v502_v20 = vsel %vm462_vm2, 0.0, %v349_v15 }
  0xf3   : > { %986 = vst.msk [vmem:[%s1341_s24 + $0x238] sm:$0x3] %vm916_vm1, %v899_v17  ;;  %v567_v21 = vsel %vm527_vm3, %v502_v20, 0.0  ;;  %v501_v22 = vsel %vm462_vm2, 0.0, %v347_v16 }
  0xf4   : > { %984 = vst.msk [vmem:[%s1341_s24 + $0x228] sm:$0xff] %vm913_vm0, %v867_v19  ;;  %985 = vst.msk [vmem:[%s1341_s24 + $0x230] sm:$0xff] %vm913_vm0, %v713_v18  ;;  %v715_v23 = vrot.slane %v567_v21, 7  ;;  %v566_v24 = vsel %vm527_vm3, %v501_v22, 0.0 }
  0xf5   : > { %v714_v25 = vrot.slane %v566_v24, 7  ;;  %v353_v26 = vpop.permute.xlu1 %352  ;;  %v351_v27 = vpop.permute.xlu0 %350 }
  0xf6   : > { %v900_v28 = vsel %vm656_vm4, %v715_v23, 0.0  ;;  %v504_v29 = vsel %vm462_vm2, 0.0, %v353_v26  ;;  %v503_v30 = vsel %vm462_vm2, 0.0, %v351_v27 }
  0xf7   : > { %989 = vst.msk [vmem:[%s1341_s24 + $0x250] sm:$0x3] %vm916_vm1, %v900_v28  ;;  %v716_v31 = vsel %vm656_vm4, %v714_v25, %v715_v23  ;;  %v868_v32 = vsel %vm656_vm4, 0.0, %v714_v25  ;;  %v569_v33 = vsel %vm527_vm3, %v504_v29, 0.0  ;;  %v568_v34 = vsel %vm527_vm3, %v503_v30, 0.0 }
  0xf8   : > { %987 = vst.msk [vmem:[%s1341_s24 + $0x240] sm:$0xff] %vm913_vm0, %v868_v32  ;;  %988 = vst.msk [vmem:[%s1341_s24 + $0x248] sm:$0xff] %vm913_vm0, %v716_v31  ;;  %v718_v35 = vrot.slane %v569_v33, 7  ;;  %v717_v36 = vrot.slane %v568_v34, 7 }
  0xf9   : > { %v357_v37 = vpop.permute.xlu1 %356  ;;  %v355_v38 = vpop.permute.xlu0 %354 }
  0xfa   : > { %v901_v39 = vsel %vm656_vm4, %v718_v35, 0.0  ;;  %v719_v40 = vsel %vm656_vm4, %v717_v36, %v718_v35  ;;  %v869_v41 = vsel %vm656_vm4, 0.0, %v717_v36  ;;  %v506_v42 = vsel %vm462_vm2, 0.0, %v357_v37 }
  0xfb   : > { %992 = vst.msk [vmem:[%s1341_s24 + $0x268] sm:$0x3] %vm916_vm1, %v901_v39  ;;  %v571_v43 = vsel %vm527_vm3, %v506_v42, 0.0  ;;  %v505_v44 = vsel %vm462_vm2, 0.0, %v355_v38 }
  0xfc   : > { %990 = vst.msk [vmem:[%s1341_s24 + $0x258] sm:$0xff] %vm913_vm0, %v869_v41  ;;  %991 = vst.msk [vmem:[%s1341_s24 + $0x260] sm:$0xff] %vm913_vm0, %v719_v40  ;;  %v721_v45 = vrot.slane %v571_v43, 7  ;;  %v570_v46 = vsel %vm527_vm3, %v505_v44, 0.0 }
  0xfd   : > { %v720_v47 = vrot.slane %v570_v46, 7  ;;  %v361_v48 = vpop.permute.xlu1 %360  ;;  %v359_v49 = vpop.permute.xlu0 %358 }
  0xfe   : > { %v902_v50 = vsel %vm656_vm4, %v721_v45, 0.0  ;;  %v508_v51 = vsel %vm462_vm2, 0.0, %v361_v48  ;;  %v507_v52 = vsel %vm462_vm2, 0.0, %v359_v49 }
  0xff   : > { %995 = vst.msk [vmem:[%s1341_s24 + $0x280] sm:$0x3] %vm916_vm1, %v902_v50  ;;  %v722_v53 = vsel %vm656_vm4, %v720_v47, %v721_v45  ;;  %v870_v54 = vsel %vm656_vm4, 0.0, %v720_v47  ;;  %v573_v55 = vsel %vm527_vm3, %v508_v51, 0.0  ;;  %v572_v56 = vsel %vm527_vm3, %v507_v52, 0.0 }
 0x100   : > { %993 = vst.msk [vmem:[%s1341_s24 + $0x270] sm:$0xff] %vm913_vm0, %v870_v54  ;;  %994 = vst.msk [vmem:[%s1341_s24 + $0x278] sm:$0xff] %vm913_vm0, %v722_v53  ;;  %v724_v57 = vrot.slane %v573_v55, 7  ;;  %v723_v58 = vrot.slane %v572_v56, 7 }
 0x101   : > { %v365_v59 = vpop.permute.xlu1 %364  ;;  %v363_v60 = vpop.permute.xlu0 %362 }
 0x102   : > { %v903_v61 = vsel %vm656_vm4, %v724_v57, 0.0  ;;  %v725_v62 = vsel %vm656_vm4, %v723_v58, %v724_v57  ;;  %v871_v63 = vsel %vm656_vm4, 0.0, %v723_v58  ;;  %v510_v0 = vsel %vm462_vm2, 0.0, %v365_v59 }
 0x103   : > { %998 = vst.msk [vmem:[%s1341_s24 + $0x298] sm:$0x3] %vm916_vm1, %v903_v61  ;;  %v575_v1 = vsel %vm527_vm3, %v510_v0, 0.0  ;;  %v509_v2 = vsel %vm462_vm2, 0.0, %v363_v60 }
 0x104   : > { %996 = vst.msk [vmem:[%s1341_s24 + $0x288] sm:$0xff] %vm913_vm0, %v871_v63  ;;  %997 = vst.msk [vmem:[%s1341_s24 + $0x290] sm:$0xff] %vm913_vm0, %v725_v62  ;;  %v727_v3 = vrot.slane %v575_v1, 7  ;;  %v574_v4 = vsel %vm527_vm3, %v509_v2, 0.0 }
 0x105   : > { %v726_v5 = vrot.slane %v574_v4, 7  ;;  %v369_v6 = vpop.permute.xlu1 %368  ;;  %v367_v7 = vpop.permute.xlu0 %366 }
 0x106   : > { %v904_v8 = vsel %vm656_vm4, %v727_v3, 0.0  ;;  %v512_v9 = vsel %vm462_vm2, 0.0, %v369_v6  ;;  %v511_v10 = vsel %vm462_vm2, 0.0, %v367_v7 }
 0x107   : > { %1001 = vst.msk [vmem:[%s1341_s24 + $0x2b0] sm:$0x3] %vm916_vm1, %v904_v8  ;;  %v728_v11 = vsel %vm656_vm4, %v726_v5, %v727_v3  ;;  %v872_v12 = vsel %vm656_vm4, 0.0, %v726_v5  ;;  %v577_v13 = vsel %vm527_vm3, %v512_v9, 0.0  ;;  %v576_v14 = vsel %vm527_vm3, %v511_v10, 0.0 }
 0x108   : > { %999 = vst.msk [vmem:[%s1341_s24 + $0x2a0] sm:$0xff] %vm913_vm0, %v872_v12  ;;  %1000 = vst.msk [vmem:[%s1341_s24 + $0x2a8] sm:$0xff] %vm913_vm0, %v728_v11  ;;  %v730_v15 = vrot.slane %v577_v13, 7  ;;  %v729_v16 = vrot.slane %v576_v14, 7 }
 0x109   : > { %v373_v17 = vpop.permute.xlu1 %372  ;;  %v371_v18 = vpop.permute.xlu0 %370 }
 0x10a   : > { %v905_v19 = vsel %vm656_vm4, %v730_v15, 0.0  ;;  %v731_v20 = vsel %vm656_vm4, %v729_v16, %v730_v15  ;;  %v873_v21 = vsel %vm656_vm4, 0.0, %v729_v16  ;;  %v514_v22 = vsel %vm462_vm2, 0.0, %v373_v17 }
 0x10b   : > { %1010 = vst.msk [vmem:[%s1341_s24 + $0x2f8] sm:$0x3] %vm916_vm1, %v905_v19  ;;  %v579_v23 = vsel %vm527_vm3, %v514_v22, 0.0  ;;  %v513_v24 = vsel %vm462_vm2, 0.0, %v371_v18 }
 0x10c   : > { %1008 = vst.msk [vmem:[%s1341_s24 + $0x2e8] sm:$0xff] %vm913_vm0, %v873_v21  ;;  %1009 = vst.msk [vmem:[%s1341_s24 + $0x2f0] sm:$0xff] %vm913_vm0, %v731_v20  ;;  %v733_v25 = vrot.slane %v579_v23, 7  ;;  %v578_v26 = vsel %vm527_vm3, %v513_v24, 0.0 }
 0x10d   : > { %v732_v27 = vrot.slane %v578_v26, 7  ;;  %v377_v28 = vpop.permute.xlu1 %376  ;;  %v375_v29 = vpop.permute.xlu0 %374 }
 0x10e   : > { %v906_v30 = vsel %vm656_vm4, %v733_v25, 0.0  ;;  %v516_v31 = vsel %vm462_vm2, 0.0, %v377_v28  ;;  %v515_v32 = vsel %vm462_vm2, 0.0, %v375_v29 }
 0x10f   : > { %1013 = vst.msk [vmem:[%s1341_s24 + $0x310] sm:$0x3] %vm916_vm1, %v906_v30  ;;  %v734_v33 = vsel %vm656_vm4, %v732_v27, %v733_v25  ;;  %v874_v34 = vsel %vm656_vm4, 0.0, %v732_v27  ;;  %v581_v35 = vsel %vm527_vm3, %v516_v31, 0.0  ;;  %v580_v36 = vsel %vm527_vm3, %v515_v32, 0.0 }
 0x110   : > { %1011 = vst.msk [vmem:[%s1341_s24 + $0x300] sm:$0xff] %vm913_vm0, %v874_v34  ;;  %1012 = vst.msk [vmem:[%s1341_s24 + $0x308] sm:$0xff] %vm913_vm0, %v734_v33  ;;  %v736_v37 = vrot.slane %v581_v35, 7  ;;  %v735_v38 = vrot.slane %v580_v36, 7 }
 0x111   : > { %v381_v39 = vpop.permute.xlu1 %380  ;;  %v379_v40 = vpop.permute.xlu0 %378 }
 0x112   : > { %v907_v41 = vsel %vm656_vm4, %v736_v37, 0.0  ;;  %v737_v42 = vsel %vm656_vm4, %v735_v38, %v736_v37  ;;  %v875_v43 = vsel %vm656_vm4, 0.0, %v735_v38  ;;  %v518_v44 = vsel %vm462_vm2, 0.0, %v381_v39 }
 0x113   : > { %1016 = vst.msk [vmem:[%s1341_s24 + $0x328] sm:$0x3] %vm916_vm1, %v907_v41  ;;  %v583_v45 = vsel %vm527_vm3, %v518_v44, 0.0  ;;  %v517_v46 = vsel %vm462_vm2, 0.0, %v379_v40 }
 0x114   : > { %1014 = vst.msk [vmem:[%s1341_s24 + $0x318] sm:$0xff] %vm913_vm0, %v875_v43  ;;  %1015 = vst.msk [vmem:[%s1341_s24 + $0x320] sm:$0xff] %vm913_vm0, %v737_v42  ;;  %v739_v47 = vrot.slane %v583_v45, 7  ;;  %v582_v48 = vsel %vm527_vm3, %v517_v46, 0.0 }
 0x115   : > { %v738_v49 = vrot.slane %v582_v48, 7  ;;  %v385_v50 = vpop.permute.xlu1 %384  ;;  %v383_v51 = vpop.permute.xlu0 %382 }
 0x116   : > { %v908_v52 = vsel %vm656_vm4, %v739_v47, 0.0  ;;  %v520_v53 = vsel %vm462_vm2, 0.0, %v385_v50  ;;  %v519_v54 = vsel %vm462_vm2, 0.0, %v383_v51 }
 0x117   : > { %1019 = vst.msk [vmem:[%s1341_s24 + $0x340] sm:$0x3] %vm916_vm1, %v908_v52  ;;  %v740_v55 = vsel %vm656_vm4, %v738_v49, %v739_v47  ;;  %v876_v56 = vsel %vm656_vm4, 0.0, %v738_v49  ;;  %v585_v57 = vsel %vm527_vm3, %v520_v53, 0.0  ;;  %v584_v58 = vsel %vm527_vm3, %v519_v54, 0.0 }
 0x118   : > { %1017 = vst.msk [vmem:[%s1341_s24 + $0x330] sm:$0xff] %vm913_vm0, %v876_v56  ;;  %1018 = vst.msk [vmem:[%s1341_s24 + $0x338] sm:$0xff] %vm913_vm0, %v740_v55  ;;  %v742_v59 = vrot.slane %v585_v57, 7  ;;  %v741_v60 = vrot.slane %v584_v58, 7 }
 0x119   : > { %v389_v61 = vpop.permute.xlu1 %388  ;;  %v387_v62 = vpop.permute.xlu0 %386 }
 0x11a   : > { %v909_v63 = vsel %vm656_vm4, %v742_v59, 0.0  ;;  %v743_v0 = vsel %vm656_vm4, %v741_v60, %v742_v59  ;;  %v877_v1 = vsel %vm656_vm4, 0.0, %v741_v60  ;;  %v522_v2 = vsel %vm462_vm2, 0.0, %v389_v61 }
 0x11b   : > { %1022 = vst.msk [vmem:[%s1341_s24 + $0x358] sm:$0x3] %vm916_vm1, %v909_v63  ;;  %v587_v3 = vsel %vm527_vm3, %v522_v2, 0.0  ;;  %v521_v4 = vsel %vm462_vm2, 0.0, %v387_v62 }
 0x11c   : > { %1020 = vst.msk [vmem:[%s1341_s24 + $0x348] sm:$0xff] %vm913_vm0, %v877_v1  ;;  %1021 = vst.msk [vmem:[%s1341_s24 + $0x350] sm:$0xff] %vm913_vm0, %v743_v0  ;;  %v745_v5 = vrot.slane %v587_v3, 7  ;;  %v586_v6 = vsel %vm527_vm3, %v521_v4, 0.0 }
 0x11d   : > { %v744_v7 = vrot.slane %v586_v6, 7  ;;  %v393_v8 = vpop.permute.xlu1 %392  ;;  %v391_v9 = vpop.permute.xlu0 %390 }
 0x11e   : > { %v910_v10 = vsel %vm656_vm4, %v745_v5, 0.0  ;;  %v524_v11 = vsel %vm462_vm2, 0.0, %v393_v8  ;;  %v523_v12 = vsel %vm462_vm2, 0.0, %v391_v9 }
 0x11f   : > { %1025 = vst.msk [vmem:[%s1341_s24 + $0x370] sm:$0x3] %vm916_vm1, %v910_v10  ;;  %v746_v13 = vsel %vm656_vm4, %v744_v7, %v745_v5  ;;  %v878_v14 = vsel %vm656_vm4, 0.0, %v744_v7  ;;  %v589_v15 = vsel %vm527_vm3, %v524_v11, 0.0  ;;  %v588_v16 = vsel %vm527_vm3, %v523_v12, 0.0 }
 0x120   : > { %1023 = vst.msk [vmem:[%s1341_s24 + $0x360] sm:$0xff] %vm913_vm0, %v878_v14  ;;  %1024 = vst.msk [vmem:[%s1341_s24 + $0x368] sm:$0xff] %vm913_vm0, %v746_v13  ;;  %v748_v17 = vrot.slane %v589_v15, 7  ;;  %v747_v18 = vrot.slane %v588_v16, 7 }
 0x121   : > { %v397_v19 = vpop.permute.xlu1 %396  ;;  %v395_v20 = vpop.permute.xlu0 %394 }
 0x122   : > { %v911_v21 = vsel %vm656_vm4, %v748_v17, 0.0  ;;  %v749_v22 = vsel %vm656_vm4, %v747_v18, %v748_v17  ;;  %v879_v23 = vsel %vm656_vm4, 0.0, %v747_v18  ;;  %v526_v24 = vsel %vm462_vm2, 0.0, %v397_v19 }
 0x123   : > { %1028 = vst.msk [vmem:[%s1341_s24 + $0x388] sm:$0x3] %vm916_vm1, %v911_v21  ;;  %v591_v25 = vsel %vm527_vm3, %v526_v24, 0.0  ;;  %v525_v26 = vsel %vm462_vm2, 0.0, %v395_v20 }
 0x124   : > { %1026 = vst.msk [vmem:[%s1341_s24 + $0x378] sm:$0xff] %vm913_vm0, %v879_v23  ;;  %1027 = vst.msk [vmem:[%s1341_s24 + $0x380] sm:$0xff] %vm913_vm0, %v749_v22  ;;  %v751_v27 = vrot.slane %v591_v25, 7  ;;  %v590_v28 = vsel %vm527_vm3, %v525_v26, 0.0 }
 0x125   : > { %v750_v29 = vrot.slane %v590_v28, 7 }
 0x126   : > { %v912_v30 = vsel %vm656_vm4, %v751_v27, 0.0 }
 0x127   : > { %1031 = vst.msk [vmem:[%s1341_s24 + $0x3a0] sm:$0x3] %vm916_vm1, %v912_v30  ;;  %v752_v31 = vsel %vm656_vm4, %v750_v29, %v751_v27  ;;  %v880_v32 = vsel %vm656_vm4, 0.0, %v750_v29 }
 0x128   : > { %1029 = vst.msk [vmem:[%s1341_s24 + $0x390] sm:$0xff] %vm913_vm0, %v880_v32  ;;  %1030 = vst.msk [vmem:[%s1341_s24 + $0x398] sm:$0xff] %vm913_vm0, %v752_v31 }
 0x129 PF: > { %p11_p7 = scmp.ge.s32.totalorder %s1265_s11, 4   ;;  %s1953_s6 = smov %s1220_s7 }
 0x12a   : > { %s1954_s7 = smov %s1224_s8  ;;  %s1955_s8 = smov %s1275_s14 }
 0x12b   : > { %s1956_s9 = smov %s1265_s11  ;;  %13 = sbr.rel (!%p11_p7) target bundleno = 3 (0x3), region = 64 }
 0x132   :  { %1059 = vsyncpa [#allocation3], 1 }
 0x133   :  { %1061 = vsyncpa [#allocation3 + $0x1], 1 }

</bundles_post_ra>
